<compile_context>
chip_gen: v6e
topology: v6e:2x2x1
jax: 0.10.0
libtpu: 0.0.40
codegen_flags: <defaults>
</compile_context>

<pallas_src>
import functools

import jax
import jax.numpy as jnp
from jax.experimental import pallas as pl
from jax.experimental.pallas import tpu as pltpu

_MIB = 1024 * 1024


def _layernorm_kernel(x_ref, g_ref, b_ref, o_ref, *, eps):
    # x_ref/o_ref: (b_tile, C, tile_t); g_ref/b_ref: (1, C, 1)
    x = x_ref[...].astype(jnp.float32)

    # Reduce over the channel axis (axis=1 of the block).
    mean = jnp.mean(x, axis=1, keepdims=True)          # (b_tile, 1, tile_t)
    xc = x - mean                                      # reused for var + norm
    var = jnp.mean(xc * xc, axis=1, keepdims=True)     # biased (unbiased=False)
    inv = jax.lax.rsqrt(var + eps)                     # EUP slot (free-ish)

    gb = g_ref[...].astype(jnp.float32)                # (1, C, 1) broadcasts
    bb = b_ref[...].astype(jnp.float32)

    o_ref[...] = (xc * inv * gb + bb).astype(o_ref.dtype)


def _vmem_capacity_bytes():
    try:
        return int(pltpu.get_tpu_info().vmem_capacity_bytes)
    except Exception:
        return 64 * _MIB  # conservative fallback (v7x per-TC VMEM)


def _choose_tiling(B, C, T, itemsize):
    """Returns (b_tile, tile_t, vmem_limit_bytes)."""
    vmem_cap = _vmem_capacity_bytes()
    # Total VMEM the pipeline working set may occupy: larger on 128 MiB parts
    # (v5e/v6e), smaller on 64 MiB parts (v7x).
    total_budget = min(vmem_cap // 3, 28 * _MIB)
    # Live bytes per block element: 2x double-buffered input + 2x output DMA
    # buffers (native dtype) + ~3 f32 temporaries (x, xc, y).
    bytes_per_elem = 4 * itemsize + 12
    max_block_elems = max(total_budget // bytes_per_elem, C * 128)

    # Lane (T) tile: largest 128-multiple within budget; cdiv grid + masked
    # partial last tile handles non-dividing T.
    if T < 128:
        tile_t = T  # full extent (legal: equals the array dim)
    else:
        cap_t = max(128, ((max_block_elems // C) // 128) * 128)
        tile_t = min(cap_t, (T // 128) * 128)
    t_steps = pl.cdiv(T, tile_t)

    # Fold batch rows into the block while blocks are still small (< ~2 MiB of
    # HBM traffic per direction) and we either keep >= 2 grid steps (megacore /
    # 2-TC sharding) or the whole problem fits in a single block anyway.
    target_block_bytes = 2 * _MIB
    b_tile = 1
    for cand in range(2, B + 1):
        if B % cand != 0:
            continue
        if cand * C * tile_t > max_block_elems:
            break
        if b_tile * C * tile_t * itemsize >= target_block_bytes:
            break
        new_steps = (B // cand) * t_steps
        whole_in_one_block = (cand == B and t_steps == 1)
        if new_steps >= 2 or whole_in_one_block:
            b_tile = cand
        else:
            break

    # Explicit scoped-VMEM limit sized from the chosen block (with headroom) so
    # large tiles don't trip the 16/32 MiB scoped defaults while staying well
    # under physical VMEM.
    block_elems = b_tile * C * tile_t
    est_usage = block_elems * bytes_per_elem + 4 * C * 8
    vmem_limit = max(est_usage * 3 // 2 + 4 * _MIB, 32 * _MIB)
    vmem_limit = int(min(vmem_limit, max(vmem_cap - 16 * _MIB, 32 * _MIB)))
    return b_tile, tile_t, vmem_limit


def layer_norm(x, g, b, eps=1e-5):
    """x: (B, C, T); g, b: broadcastable to (1, C, 1). Returns (B, C, T)."""
    B, C, T = x.shape
    itemsize = jnp.dtype(x.dtype).itemsize
    b_tile, tile_t, vmem_limit = _choose_tiling(B, C, T, itemsize)

    g3 = jnp.reshape(g, (1, C, 1))
    b3 = jnp.reshape(b, (1, C, 1))

    grid = (B // b_tile, pl.cdiv(T, tile_t))
    kernel = functools.partial(_layernorm_kernel, eps=eps)

    cost = pl.CostEstimate(
        flops=int(7 * B * C * T),
        transcendentals=int(B * T),
        bytes_accessed=int(2 * B * C * T * itemsize + 2 * C * itemsize),
    )

    return pl.pallas_call(
        kernel,
        out_shape=jax.ShapeDtypeStruct((B, C, T), x.dtype),
        grid_spec=pltpu.PrefetchScalarGridSpec(
            num_scalar_prefetch=0,
            grid=grid,
            in_specs=[
                pl.BlockSpec((b_tile, C, tile_t), lambda i, j: (i, 0, j)),
                # params: constant block index -> VMEM-resident, no re-DMA
                pl.BlockSpec((1, C, 1), lambda i, j: (0, 0, 0)),
                pl.BlockSpec((1, C, 1), lambda i, j: (0, 0, 0)),
            ],
            out_specs=pl.BlockSpec((b_tile, C, tile_t), lambda i, j: (i, 0, j)),
        ),
        compiler_params=pltpu.CompilerParams(
            dimension_semantics=("parallel", "parallel"),
            vmem_limit_bytes=vmem_limit,
        ),
        cost_estimate=cost,
    )(x, g3, b3)


def layer_norm_ref(x, g, b, eps=1e-5):
    mean = jnp.mean(x, axis=1, keepdims=True)
    var = jnp.mean((x - mean) ** 2, axis=1, keepdims=True)  # unbiased=False
    return (x - mean) / jnp.sqrt(var + eps) * g + b


if __name__ == "__main__":
    key = jax.random.PRNGKey(0)
    B, C, T = 2, 32, 256  # batch, channels (normalized dim), sequence length
    x = jax.random.normal(key, (B, C, T), dtype=jnp.float32)

    # Deterministic, non-trivial parameters (shape matches nn.Parameter(1, dim, 1)).
    g = (1.0 + 0.05 * jnp.arange(C, dtype=jnp.float32)).reshape(1, C, 1)
    b = (0.02 * jnp.arange(C, dtype=jnp.float32) - 0.3).reshape(1, C, 1)

    out = jax.block_until_ready(layer_norm(x, g, b, eps=1e-5))
    ref = layer_norm_ref(x, g, b, eps=1e-5)
    assert out.shape == (B, C, T)
    assert jnp.allclose(out, ref, atol=1e-5, rtol=1e-5), "mismatch vs reference"

    # Non-128-divisible T (>128): exercises the cdiv grid + masked partial tile.
    x2 = jax.random.normal(jax.random.PRNGKey(1), (2, 32, 200), jnp.float32)
    out2 = jax.block_until_ready(layer_norm(x2, g, b))
    assert jnp.allclose(out2, layer_norm_ref(x2, g, b),
                        atol=1e-5, rtol=1e-5), "mismatch vs reference (T=200)"

    # Tiny T (<128): full-extent lane block.
    x3 = jax.random.normal(jax.random.PRNGKey(2), (2, 32, 16), jnp.float32)
    out3 = jax.block_until_ready(layer_norm(x3, g, b))
    assert jnp.allclose(out3, layer_norm_ref(x3, g, b),
                        atol=1e-5, rtol=1e-5), "mismatch vs reference (T=16)"

    print("KERNEL_OK")
</pallas_src>

<mosaic_0001>
module attributes {stable_mosaic.version = 11 : i64} {
  func.func @_layernorm_kernel(%arg0: i32, %arg1: i32, %arg2: memref<2x32x256xf32, #tpu.memory_space<vmem>>, %arg3: memref<1x32x1xf32, #tpu.memory_space<vmem>>, %arg4: memref<1x32x1xf32, #tpu.memory_space<vmem>>, %arg5: memref<2x32x256xf32, #tpu.memory_space<vmem>>) attributes {dimension_semantics = [#tpu.dimension_semantics<parallel>, #tpu.dimension_semantics<parallel>], iteration_bounds = array<i64: 1, 1>, scalar_prefetch = 0 : i64, scratch_operands = 0 : i64, tpu.core_type = #tpu.core_type<tc>, window_params = [{transform_indices = @transform_0, window_bounds = array<i64: 2, 32, 256>}, {pipeline_mode = #tpu.pipeline_mode<synchronous>, transform_indices = @transform_1, window_bounds = array<i64: 1, 32, 1>}, {pipeline_mode = #tpu.pipeline_mode<synchronous>, transform_indices = @transform_2, window_bounds = array<i64: 1, 32, 1>}, {transform_indices = @transform_3, window_bounds = array<i64: 2, 32, 256>}]} {
    %c0 = arith.constant 0 : index
    %c0_0 = arith.constant 0 : index
    %c0_1 = arith.constant 0 : index
    %0 = vector.load %arg2[%c0, %c0_0, %c0_1] : memref<2x32x256xf32, #tpu.memory_space<vmem>>, vector<2x32x256xf32>
    %cst = arith.constant dense<0.000000e+00> : vector<2x256xf32>
    %1 = vector.multi_reduction <add>, %0, %cst [1] : vector<2x32x256xf32> to vector<2x256xf32>
    %2 = vector.shape_cast %1 : vector<2x256xf32> to vector<2x1x256xf32>
    %cst_2 = arith.constant 3.200000e+01 : f32
    %3 = vector.broadcast %cst_2 : f32 to vector<2x1x256xf32>
    %4 = arith.divf %2, %3 : vector<2x1x256xf32>
    %5 = vector.broadcast %4 : vector<2x1x256xf32> to vector<2x32x256xf32>
    %6 = arith.subf %0, %5 : vector<2x32x256xf32>
    %7 = arith.mulf %6, %6 : vector<2x32x256xf32>
    %cst_3 = arith.constant dense<0.000000e+00> : vector<2x256xf32>
    %8 = vector.multi_reduction <add>, %7, %cst_3 [1] : vector<2x32x256xf32> to vector<2x256xf32>
    %9 = vector.shape_cast %8 : vector<2x256xf32> to vector<2x1x256xf32>
    %cst_4 = arith.constant 3.200000e+01 : f32
    %10 = vector.broadcast %cst_4 : f32 to vector<2x1x256xf32>
    %11 = arith.divf %9, %10 : vector<2x1x256xf32>
    %cst_5 = arith.constant 9.99999974E-6 : f32
    %12 = vector.broadcast %cst_5 : f32 to vector<2x1x256xf32>
    %13 = arith.addf %11, %12 : vector<2x1x256xf32>
    %14 = math.rsqrt %13 : vector<2x1x256xf32>
    %c0_6 = arith.constant 0 : index
    %c0_7 = arith.constant 0 : index
    %c0_8 = arith.constant 0 : index
    %15 = vector.load %arg3[%c0_6, %c0_7, %c0_8] : memref<1x32x1xf32, #tpu.memory_space<vmem>>, vector<1x32x1xf32>
    %c0_9 = arith.constant 0 : index
    %c0_10 = arith.constant 0 : index
    %c0_11 = arith.constant 0 : index
    %16 = vector.load %arg4[%c0_9, %c0_10, %c0_11] : memref<1x32x1xf32, #tpu.memory_space<vmem>>, vector<1x32x1xf32>
    %17 = vector.broadcast %14 : vector<2x1x256xf32> to vector<2x32x256xf32>
    %18 = arith.mulf %6, %17 : vector<2x32x256xf32>
    %19 = vector.broadcast %15 : vector<1x32x1xf32> to vector<2x32x256xf32>
    %20 = arith.mulf %18, %19 : vector<2x32x256xf32>
    %21 = vector.broadcast %16 : vector<1x32x1xf32> to vector<2x32x256xf32>
    %22 = arith.addf %20, %21 : vector<2x32x256xf32>
    %c0_12 = arith.constant 0 : index
    %c0_13 = arith.constant 0 : index
    %c0_14 = arith.constant 0 : index
    %23 = vector.load %arg5[%c0_12, %c0_13, %c0_14] : memref<2x32x256xf32, #tpu.memory_space<vmem>>, vector<2x32x256xf32>
    tpu.vector_store %arg5[%c0_12, %c0_13, %c0_14], %22 {strides = array<i32>} : memref<2x32x256xf32, #tpu.memory_space<vmem>>, vector<2x32x256xf32>,
    return
  }
  func.func @transform_0(%arg0: i32, %arg1: i32) -> (i32, i32, i32) {
    %c0_i32 = arith.constant 0 : i32
    %c0_i32_0 = arith.constant 0 : i32
    return %arg0, %c0_i32, %arg1 : i32, i32, i32
  }
  func.func @transform_1(%arg0: i32, %arg1: i32) -> (i32, i32, i32) {
    %c0_i32 = arith.constant 0 : i32
    %c0_i32_0 = arith.constant 0 : i32
    %c0_i32_1 = arith.constant 0 : i32
    %c0_i32_2 = arith.constant 0 : i32
    return %c0_i32, %c0_i32_0, %c0_i32_1 : i32, i32, i32
  }
  func.func @transform_2(%arg0: i32, %arg1: i32) -> (i32, i32, i32) {
    %c0_i32 = arith.constant 0 : i32
    %c0_i32_0 = arith.constant 0 : i32
    %c0_i32_1 = arith.constant 0 : i32
    %c0_i32_2 = arith.constant 0 : i32
    return %c0_i32, %c0_i32_0, %c0_i32_1 : i32, i32, i32
  }
  func.func @transform_3(%arg0: i32, %arg1: i32) -> (i32, i32, i32) {
    %c0_i32 = arith.constant 0 : i32
    %c0_i32_0 = arith.constant 0 : i32
    return %arg0, %c0_i32, %arg1 : i32, i32, i32
  }
}

</mosaic_0001>

<bundles_post_ra>
// kernel: tpu_custom_call.1
= control target key start
LH: loop header
LB: loop body
LE: loop exit
PB: predicated region body
PF: predicated region fallthrough
CT: control target
= control target key end

     0   :  { %8 = vsyncpa [#allocation3], 0  ;;  %s495_s0 = inlined_call_operand.hbm [shape: f32[2,32,256], index: 0, kind: input, shape index: {}]   ;;  %s496_s1 = inlined_call_operand.vmem [shape: f32[1,32,1], index: 1, kind: input, shape index: {}]   ;;  %s497_s2 = inlined_call_operand.vmem [shape: f32[1,32,1], index: 2, kind: input, shape index: {}]   ;;  %s498_s3 = inlined_call_operand.hbm [shape: f32[2,32,256], index: 3, kind: output, shape index: {}]  }
   0x1   :  { %9 = vsyncpa [#allocation4], 0  ;;  %s354_s12 = smov [#allocation2]  }
   0x2   :  { %s15_s13 = sshll.u32 %s354_s12, 4  ;;  %s16_s13 = int_to_ptr.vmem [resolvable:$true] %s15_s13 }
   0x3   :  { %s318_s14 = scalar_lea.vmem %s16_s13, 2048  ;;  %p323_p1 = scmp.lt.s32.totalorder %s16_s13, %s16_s13 }
   0x4   :  { %p319_p0 = scmp.ne.s32.totalorder %s16_s13, %s318_s14  ;;  %p324_p2 = scmp.lt.s32.totalorder %s318_s14, %s318_s14 }
   0x6   :  { %p325_p3 = por %p324_p2, %p323_p1 }
   0x8   :  { %p326_p4 = pnand %p325_p3, %p319_p0 }
   0xa   :  { %329 = shalt.err (!%p326_p4)
}
   0xb   :  { %s355_s15 = smov 256   ;;  %s356_s16 = smov 16  }
   0xc   :  { %21 = dma.hbm_to_vmem [thread:$0]  %s495_s0, 2048, %s16_s13, [#allocation3], %s355_s15, %s355_s15, %s356_s16  }
   0xd   :  { %350 = dma.done.wait [#allocation3], 2048  }
   0xe   :  { %351 = vsyncadd [#allocation3], 4294965248  ;;  %v357_v0 = vmov 0   ;;  %v168_v1 = vld [vmem:[%s496_s1 + $0x10] sm:$0xff]  ;;  %v166_v2 = vld [vmem:[%s496_s1] sm:$0xff] }
   0xf   :  { %301 = vset.pattern.permute.xlu1 %v357_v0  ;;  %300 = vset.pattern.permute.xlu0 %v357_v0  ;;  %v169_v3 = vld [vmem:[%s496_s1 + $0x18] sm:$0xff]  ;;  %v167_v4 = vld [vmem:[%s496_s1 + $0x8] sm:$0xff]  ;;  %v170_v6 = vld [vmem:[%s497_s2] sm:$0xff]  ;;  %s358_s1 = smov [#allocation5]  }
  0x10   :  { %202 = vperm.xlu1 %301, %v168_v1   ;;  %192 = vperm.xlu0 %300, %v166_v2   ;;  %v171_v5 = vld [vmem:[%s497_s2 + $0x8] sm:$0xff]  ;;  %v173_v7 = vld [vmem:[%s497_s2 + $0x18] sm:$0xff]  ;;  %v172_v8 = vld [vmem:[%s497_s2 + $0x10] sm:$0xff]  ;;  %s283_s2 = sshll.u32 %s358_s1, 4  ;;  %s284_s2 = int_to_ptr.vmem [resolvable:$true] %s283_s2 }
  0x11   :  { %v29_v9 = vld [vmem:[#allocation2] sm:$0xff]  ;;  %v31_v10 = vld [vmem:[#allocation2 + $0x10] sm:$0xff]  ;;  %v30_v11 = vld [vmem:[#allocation2 + $0x8] sm:$0xff]  ;;  %s330_s7 = scalar_lea.vmem %s284_s2, 2048  ;;  %p335_p6 = scmp.lt.s32.totalorder %s284_s2, %s284_s2 }
  0x12   :  { %v32_v12 = vld [vmem:[#allocation2 + $0x18] sm:$0xff]  ;;  %v37_v13 = vld [vmem:[#allocation2 + $0x40] sm:$0xff]  ;;  %v39_v14 = vld [vmem:[#allocation2 + $0x50] sm:$0xff]  ;;  %v45_v17 = vadd.f32 %v31_v10, %v29_v9  ;;  %p331_p5 = scmp.ne.s32.totalorder %s284_s2, %s330_s7  ;;  %p336_p7 = scmp.lt.s32.totalorder %s330_s7, %s330_s7 }
  0x13   :  { %v38_v15 = vld [vmem:[#allocation2 + $0x48] sm:$0xff]  ;;  %v40_v16 = vld [vmem:[#allocation2 + $0x58] sm:$0xff]  ;;  %v33_v18 = vld [vmem:[#allocation2 + $0x20] sm:$0xff]  ;;  %v54_v19 = vadd.f32 %v32_v12, %v30_v11  ;;  %v63_v21 = vadd.f32 %v39_v14, %v37_v13 }
  0x14   :  { %207 = vperm.xlu1 %301, %v169_v3   ;;  %197 = vperm.xlu0 %300, %v167_v4   ;;  %v34_v20 = vld [vmem:[#allocation2 + $0x28] sm:$0xff]  ;;  %v41_v22 = vld [vmem:[#allocation2 + $0x60] sm:$0xff]  ;;  %v72_v23 = vadd.f32 %v40_v16, %v38_v15  ;;  %v46_v25 = vadd.f32 %v45_v17, %v33_v18  ;;  %v35_v26 = vld [vmem:[#allocation2 + $0x30] sm:$0xff]  ;;  %p337_p8 = por %p336_p7, %p335_p6 }
  0x15   :  { %v42_v24 = vld [vmem:[#allocation2 + $0x68] sm:$0xff]  ;;  %v55_v27 = vadd.f32 %v54_v19, %v34_v20  ;;  %v36_v28 = vld [vmem:[#allocation2 + $0x38] sm:$0xff]  ;;  %v64_v29 = vadd.f32 %v63_v21, %v41_v22  ;;  %v43_v30 = vld [vmem:[#allocation2 + $0x70] sm:$0xff] }
  0x16   :  { %v73_v31 = vadd.f32 %v72_v23, %v42_v24  ;;  %v44_v32 = vld [vmem:[#allocation2 + $0x78] sm:$0xff]  ;;  %v47_v33 = vadd.f32 %v46_v25, %v35_v26  ;;  %p338_p9 = pnand %p337_p8, %p331_p5 }
  0x17   :  { %v56_v34 = vadd.f32 %v55_v27, %v36_v28  ;;  %v65_v35 = vadd.f32 %v64_v29, %v43_v30 }
  0x18   :  { %233 = vperm.xlu1 %301, %v171_v5   ;;  %228 = vperm.xlu0 %300, %v170_v6   ;;  %v74_v36 = vadd.f32 %v73_v31, %v44_v32  ;;  %v48_v37 = vrot.slane %v47_v33, 4 }
  0x19   :  { %v57_v38 = vrot.slane %v56_v34, 4  ;;  %v66_v39 = vrot.slane %v65_v35, 4 }
  0x1a   :  { %v75_v40 = vrot.slane %v74_v36, 4  ;;  %v49_v41 = vadd.f32 %v48_v37, %v47_v33 }
  0x1b   :  { %v58_v42 = vadd.f32 %v57_v38, %v56_v34  ;;  %v67_v43 = vadd.f32 %v66_v39, %v65_v35 }
  0x1c   :  { %243 = vperm.xlu1 %301, %v173_v7   ;;  %238 = vperm.xlu0 %300, %v172_v8   ;;  %v76_v44 = vadd.f32 %v75_v40, %v74_v36  ;;  %v50_v45 = vrot.slane %v49_v41, 2 }
  0x1d   :  { %v59_v46 = vrot.slane %v58_v42, 2  ;;  %v68_v47 = vrot.slane %v67_v43, 2 }
  0x1e   :  { %v77_v48 = vrot.slane %v76_v44, 2  ;;  %v51_v49 = vadd.f32 %v50_v45, %v49_v41 }
  0x1f   :  { %v60_v50 = vadd.f32 %v59_v46, %v58_v42  ;;  %v69_v51 = vadd.f32 %v68_v47, %v67_v43 }
  0x20   :  { %v78_v52 = vadd.f32 %v77_v48, %v76_v44  ;;  %v52_v53 = vrot.slane %v51_v49, 1 }
  0x21   :  { %v61_v54 = vrot.slane %v60_v50, 1  ;;  %v70_v55 = vrot.slane %v69_v51, 1 }
  0x22   :  { %v79_v56 = vrot.slane %v78_v52, 1  ;;  %v53_v57 = vadd.f32 %v52_v53, %v51_v49 }
  0x23   :  { %v62_v58 = vadd.f32 %v61_v54, %v60_v50  ;;  %v71_v59 = vadd.f32 %v70_v55, %v69_v51 }
  0x24   :  { %v80_v60 = vadd.f32 %v79_v56, %v78_v52  ;;  %v82_v61 = vmul.f32 0.03125, %v53_v57 }
  0x25   :  { %v83_v62 = vmul.f32 0.03125, %v62_v58  ;;  %v84_v63 = vmul.f32 0.03125, %v71_v59 }
  0x26   :  { %v85_v0 = vmul.f32 0.03125, %v80_v60  ;;  %v409_v1 = vsub.f32 %v29_v9, %v82_v61  ;;  %v411_v2 = vsub.f32 %v31_v10, %v82_v61  ;;  %v425_v17 = vsub.f32 %v33_v18, %v82_v61 }
  0x27   :  { %v413_v3 = vsub.f32 %v30_v11, %v83_v62  ;;  %v415_v4 = vsub.f32 %v32_v12, %v83_v62  ;;  %v417_v5 = vsub.f32 %v37_v13, %v84_v63  ;;  %v419_v6 = vsub.f32 %v39_v14, %v84_v63 }
  0x28   :  { %v421_v7 = vsub.f32 %v38_v15, %v85_v0  ;;  %v423_v8 = vsub.f32 %v40_v16, %v85_v0  ;;  %v102_v9 = vmul.f32 %v409_v1, %v409_v1  ;;  %v104_v10 = vmul.f32 %v411_v2, %v411_v2 }
  0x29   :  { %v431_v11 = vsub.f32 %v34_v20, %v83_v62  ;;  %v103_v12 = vmul.f32 %v413_v3, %v413_v3  ;;  %v105_v13 = vmul.f32 %v415_v4, %v415_v4  ;;  %v437_v14 = vsub.f32 %v41_v22, %v84_v63 }
  0x2a   :  { %v110_v15 = vmul.f32 %v417_v5, %v417_v5  ;;  %v112_v16 = vmul.f32 %v419_v6, %v419_v6  ;;  %v443_v18 = vsub.f32 %v42_v24, %v85_v0  ;;  %v111_v19 = vmul.f32 %v421_v7, %v421_v7 }
  0x2b   :  { %v113_v20 = vmul.f32 %v423_v8, %v423_v8  ;;  %v449_v21 = vsub.f32 %v35_v26, %v82_v61  ;;  %v106_v22 = vmul.f32 %v425_v17, %v425_v17  ;;  %v118_v23 = vadd.f32 %v104_v10, %v102_v9 }
  0x2c   :  { %v453_v25 = vsub.f32 %v36_v28, %v83_v62  ;;  %v107_v27 = vmul.f32 %v431_v11, %v431_v11  ;;  %v127_v29 = vadd.f32 %v105_v13, %v103_v12  ;;  %v457_v24 = vsub.f32 %v43_v30, %v84_v63 }
  0x2d   :  { %v114_v31 = vmul.f32 %v437_v14, %v437_v14  ;;  %v136_v33 = vadd.f32 %v112_v16, %v110_v15  ;;  %v461_v34 = vsub.f32 %v44_v32, %v85_v0  ;;  %v115_v26 = vmul.f32 %v443_v18, %v443_v18 }
  0x2e   :  { %v145_v35 = vadd.f32 %v113_v20, %v111_v19  ;;  %v108_v28 = vmul.f32 %v449_v21, %v449_v21  ;;  %v119_v36 = vadd.f32 %v118_v23, %v106_v22  ;;  %v109_v37 = vmul.f32 %v453_v25, %v453_v25 }
  0x2f   :  { %v128_v38 = vadd.f32 %v127_v29, %v107_v27  ;;  %v116_v30 = vmul.f32 %v457_v24, %v457_v24  ;;  %v137_v39 = vadd.f32 %v136_v33, %v114_v31  ;;  %v117_v32 = vmul.f32 %v461_v34, %v461_v34 }
  0x30   :  { %v146_v40 = vadd.f32 %v145_v35, %v115_v26  ;;  %v120_v41 = vadd.f32 %v119_v36, %v108_v28 }
  0x31   :  { %v129_v42 = vadd.f32 %v128_v38, %v109_v37  ;;  %v138_v43 = vadd.f32 %v137_v39, %v116_v30 }
  0x32   :  { %v147_v44 = vadd.f32 %v146_v40, %v117_v32  ;;  %v121_v45 = vrot.slane %v120_v41, 4 }
  0x33   :  { %v130_v46 = vrot.slane %v129_v42, 4  ;;  %v139_v47 = vrot.slane %v138_v43, 4 }
  0x34   :  { %v148_v48 = vrot.slane %v147_v44, 4  ;;  %v122_v49 = vadd.f32 %v121_v45, %v120_v41 }
  0x35   :  { %v131_v50 = vadd.f32 %v130_v46, %v129_v42  ;;  %v140_v51 = vadd.f32 %v139_v47, %v138_v43 }
  0x36   :  { %v149_v52 = vadd.f32 %v148_v48, %v147_v44  ;;  %v123_v53 = vrot.slane %v122_v49, 2 }
  0x37   :  { %v132_v54 = vrot.slane %v131_v50, 2  ;;  %v141_v55 = vrot.slane %v140_v51, 2 }
  0x38   :  { %v150_v56 = vrot.slane %v149_v52, 2  ;;  %v124_v57 = vadd.f32 %v123_v53, %v122_v49 }
  0x39   :  { %v133_v58 = vadd.f32 %v132_v54, %v131_v50  ;;  %v142_v59 = vadd.f32 %v141_v55, %v140_v51 }
  0x3a   :  { %v151_v60 = vadd.f32 %v150_v56, %v149_v52  ;;  %v125_v61 = vrot.slane %v124_v57, 1 }
  0x3b   :  { %v134_v62 = vrot.slane %v133_v58, 1  ;;  %v143_v63 = vrot.slane %v142_v59, 1 }
  0x3c   :  { %v152_v0 = vrot.slane %v151_v60, 1  ;;  %v126_v9 = vadd.f32 %v125_v61, %v124_v57 }
  0x3d   :  { %v135_v10 = vadd.f32 %v134_v62, %v133_v58  ;;  %v144_v12 = vadd.f32 %v143_v63, %v142_v59 }
  0x3e   :  { %v153_v13 = vadd.f32 %v152_v0, %v151_v60  ;;  %v154_v15 = vmul.f32 0.03125, %v126_v9 }
  0x3f   :  { %v155_v16 = vmul.f32 0.03125, %v135_v10  ;;  %v156_v19 = vmul.f32 0.03125, %v144_v12 }
  0x40   :  { %v157_v20 = vmul.f32 0.03125, %v153_v13  ;;  %v158_v22 = vadd.f32 1e-05, %v154_v15 }
  0x41   :  { %v159_v23 = vadd.f32 1e-05, %v155_v16  ;;  %v160_v27 = vadd.f32 1e-05, %v156_v19 }
  0x42   :  { %v161_v29 = vadd.f32 1e-05, %v157_v20  ;;  %302 = vrsqrt.f32 %v158_v22 }
  0x43   :  { %304 = vrsqrt.f32 %v159_v23 }
  0x44   :  { %306 = vrsqrt.f32 %v160_v27 }
  0x45   :  { %308 = vrsqrt.f32 %v161_v29 }
  0x4f   :  { %v303_v31 = vpop.eup %302 }
  0x50   :  { %v305_v33 = vpop.eup %304  ;;  %v176_v37 = vmul.f32 %v303_v31, %v411_v2  ;;  %v174_v32 = vmul.f32 %v303_v31, %v409_v1  ;;  %v180_v45 = vmul.f32 %v303_v31, %v449_v21 }
  0x51   :  { %v307_v26 = vpop.eup %306  ;;  %v177_v38 = vmul.f32 %v305_v33, %v415_v4  ;;  %v175_v40 = vmul.f32 %v305_v33, %v413_v3  ;;  %v181_v2 = vmul.f32 %v305_v33, %v453_v25  ;;  %v178_v4 = vmul.f32 %v303_v31, %v425_v17 }
  0x52   :  { %v309_v36 = vpop.eup %308  ;;  %v184_v30 = vmul.f32 %v307_v26, %v419_v6  ;;  %v182_v41 = vmul.f32 %v307_v26, %v417_v5  ;;  %v179_v6 = vmul.f32 %v305_v33, %v431_v11  ;;  %v186_v3 = vmul.f32 %v307_v26, %v437_v14 }
  0x53   :  { %v185_v39 = vmul.f32 %v309_v36, %v423_v8  ;;  %v183_v42 = vmul.f32 %v309_v36, %v421_v7  ;;  %v188_v8 = vmul.f32 %v307_v26, %v457_v24  ;;  %v189_v1 = vmul.f32 %v309_v36, %v461_v34 }
  0x54   :  { %v187_v5 = vmul.f32 %v309_v36, %v443_v18 }
  0x8b   :  { %v203_v35 = vpop.permute.xlu1 %202  ;;  %v193_v28 = vpop.permute.xlu0 %192 }
  0x8c   :  { %v210_v49 = vmul.f32 %v193_v28, %v174_v32  ;;  %v211_v21 = vmul.f32 %v193_v28, %v175_v40  ;;  %v218_v50 = vmul.f32 %v193_v28, %v182_v41  ;;  %v219_v25 = vmul.f32 %v193_v28, %v183_v42 }
  0x8d   :  { %v214_v61 = vmul.f32 %v203_v35, %v178_v4  ;;  %v215_v62 = vmul.f32 %v203_v35, %v179_v6  ;;  %v222_v63 = vmul.f32 %v203_v35, %v186_v3  ;;  %v223_v0 = vmul.f32 %v203_v35, %v187_v5 }
  0x8f   :  { %v208_v43 = vpop.permute.xlu1 %207  ;;  %v198_v44 = vpop.permute.xlu0 %197 }
  0x90   :  { %v212_v46 = vmul.f32 %v198_v44, %v176_v37  ;;  %v213_v7 = vmul.f32 %v198_v44, %v177_v38  ;;  %v220_v47 = vmul.f32 %v198_v44, %v184_v30  ;;  %v221_v48 = vmul.f32 %v198_v44, %v185_v39 }
  0x91   :  { %v216_v18 = vmul.f32 %v208_v43, %v180_v45  ;;  %v217_v56 = vmul.f32 %v208_v43, %v181_v2  ;;  %v224_v57 = vmul.f32 %v208_v43, %v188_v8  ;;  %v225_v58 = vmul.f32 %v208_v43, %v189_v1 }
  0x93   :  { %v234_v51 = vpop.permute.xlu1 %233  ;;  %v229_v17 = vpop.permute.xlu0 %228 }
  0x94   :  { %v248_v52 = vadd.f32 %v234_v51, %v212_v46  ;;  %v249_v11 = vadd.f32 %v234_v51, %v213_v7  ;;  %v256_v53 = vadd.f32 %v234_v51, %v220_v47  ;;  %v257_v24 = vadd.f32 %v234_v51, %v221_v48 }
  0x95   :  { %v246_v54 = vadd.f32 %v229_v17, %v210_v49  ;;  %v247_v34 = vadd.f32 %v229_v17, %v211_v21  ;;  %v254_v55 = vadd.f32 %v229_v17, %v218_v50  ;;  %v255_v14 = vadd.f32 %v229_v17, %v219_v25 }
  0x96   :  { %264 = vst [vmem:[#allocation5 + $0x10] sm:$0xff] %v248_v52  ;;  %265 = vst [vmem:[#allocation5 + $0x18] sm:$0xff] %v249_v11 }
  0x97   :  { %272 = vst [vmem:[#allocation5 + $0x50] sm:$0xff] %v256_v53  ;;  %273 = vst [vmem:[#allocation5 + $0x58] sm:$0xff] %v257_v24  ;;  %v244_v59 = vpop.permute.xlu1 %243  ;;  %v239_v60 = vpop.permute.xlu0 %238 }
  0x98   :  { %262 = vst [vmem:[#allocation5] sm:$0xff] %v246_v54  ;;  %263 = vst [vmem:[#allocation5 + $0x8] sm:$0xff] %v247_v34  ;;  %v252_v9 = vadd.f32 %v244_v59, %v216_v18  ;;  %v253_v10 = vadd.f32 %v244_v59, %v217_v56  ;;  %v260_v12 = vadd.f32 %v244_v59, %v224_v57 }
  0x99   :  { %270 = vst [vmem:[#allocation5 + $0x40] sm:$0xff] %v254_v55  ;;  %271 = vst [vmem:[#allocation5 + $0x48] sm:$0xff] %v255_v14  ;;  %v261_v13 = vadd.f32 %v244_v59, %v225_v58  ;;  %v250_v15 = vadd.f32 %v239_v60, %v214_v61  ;;  %v251_v16 = vadd.f32 %v239_v60, %v215_v62 }
  0x9a   :  { %v258_v19 = vadd.f32 %v239_v60, %v222_v63  ;;  %v259_v20 = vadd.f32 %v239_v60, %v223_v0  ;;  %268 = vst [vmem:[#allocation5 + $0x30] sm:$0xff] %v252_v9  ;;  %269 = vst [vmem:[#allocation5 + $0x38] sm:$0xff] %v253_v10 }
  0x9b   :  { %276 = vst [vmem:[#allocation5 + $0x70] sm:$0xff] %v260_v12  ;;  %277 = vst [vmem:[#allocation5 + $0x78] sm:$0xff] %v261_v13 }
  0x9c   :  { %266 = vst [vmem:[#allocation5 + $0x20] sm:$0xff] %v250_v15  ;;  %267 = vst [vmem:[#allocation5 + $0x28] sm:$0xff] %v251_v16 }
  0x9d   :  { %274 = vst [vmem:[#allocation5 + $0x60] sm:$0xff] %v258_v19  ;;  %275 = vst [vmem:[#allocation5 + $0x68] sm:$0xff] %v259_v20 }
  0x9e   :  { %341 = shalt.err (!%p338_p9)
}
  0x9f   :  { %289 = dma.vmem_to_hbm [thread:$0]  %s284_s2, 2048, %s498_s3, [#allocation4], %s355_s15, %s355_s15, %s356_s16  }
  0xa0   :  { %352 = dma.done.wait [#allocation4], 2048  }
  0xa1   :  { %353 = vsyncadd [#allocation4], 4294965248 }
  0xa2   :  { %293 = vsyncpa [#allocation3], 1 }
  0xa3   :  { %294 = vsyncpa [#allocation4], 1 }

</bundles_post_ra>
